<compile_context>
chip_gen: v5e
topology: v5e:2x2
jax: 0.10.0
libtpu: 0.0.40
codegen_flags: <defaults>
</compile_context>

<pallas_src>
import functools
import math

import jax
import jax.numpy as jnp
from jax import lax
from jax.experimental import pallas as pl
from jax.experimental.pallas import tpu as pltpu

_PAD_LABEL = int(jnp.iinfo(jnp.int32).min)  # sentinel label for padded rows


def _round_up(x, m):
    return ((x + m - 1) // m) * m


def _shrink_tile(t):
    t = max(128, t // 2)
    return max(128, (t // 128) * 128)


# ---------------------------------------------------------------------------
# Prep kernel: L2-normalize rows, fold 1/sqrt(temperature), cast to MXU dtype.
# ---------------------------------------------------------------------------
def _normalize_scale_kernel(f_ref, o_ref, *, inv_sqrt_t):
    f = f_ref[...].astype(jnp.float32)
    ssq = jnp.sum(f * f, axis=1, keepdims=True)
    # rsqrt(max(ssq, eps^2)) == 1 / max(||f||, eps); eps=1e-12 matches
    # torch.nn.functional.normalize.  rsqrt runs on the EUP slot.
    scale = lax.rsqrt(jnp.maximum(ssq, 1e-24)) * inv_sqrt_t
    o_ref[...] = (f * scale).astype(o_ref.dtype)


# ---------------------------------------------------------------------------
# Main kernel: tiled Gram matrix + constant-shift online LSE over key tiles.
#   accumulators (merged scratch, lane-padded once):
#     acc[:, 0] = running sum_j exp(s_ij - 1/T)   (valid keys only)
#     acc[:, 1] = running sum_j pos_ij * s_ij
#     acc[:, 2] = running num positives
# ---------------------------------------------------------------------------
def _csloss2_tile_kernel(fq_ref, fk_ref, lab_q_ref, lab_k_ref, out_ref,
                         acc_ref, *, shift, block_cols, keys_resident):
    k = pl.program_id(1)

    @pl.when(k == 0)
    def _():
        acc_ref[...] = jnp.zeros_like(acc_ref)

    col0 = pl.multiple_of(k * block_cols, block_cols)
    if keys_resident:
        # Key matrix is fully VMEM-resident (constant index_map, DMA'd once);
        # slice the current key tile in-kernel.
        fk = fk_ref[pl.ds(col0, block_cols), :]
    else:
        fk = fk_ref[...]
    lab_k = lab_k_ref[:, pl.ds(col0, block_cols)]          # (1, tk) int32

    # s_ij = <f_i, f_j> / T  (normalization and 1/sqrt(T) folded upstream).
    # Contract the feature (lane) axis of both operands: no .T / relayout.
    s = lax.dot_general(fq_ref[...], fk,
                        dimension_numbers=(((1,), (1,)), ((), ())),
                        preferred_element_type=jnp.float32)  # (tm, tk) f32

    lab_q = lab_q_ref[...]                    # (tm, 1) int32 (query labels)
    valid_k = lab_k != _PAD_LABEL             # real (un-padded) key columns
    pos = (lab_q == lab_k) & valid_k          # positives (diag included)

    # Constant-shift log-sum-exp: |s| <= 1/T by construction, so no running
    # max is needed and padded columns contribute exactly 0.
    # TODO(synk): on v6e/v7x the exp could run in bf16 on the EUP for ~2x
    # throughput in the small-D regime; kept f32 for portability/accuracy.
    e = jnp.where(valid_k, jnp.exp(s - shift), 0.0)
    l_new = acc_ref[:, 0:1] + jnp.sum(e, axis=1, keepdims=True)
    sps_new = acc_ref[:, 1:2] + jnp.sum(jnp.where(pos, s, 0.0),
                                        axis=1, keepdims=True)
    npos_new = acc_ref[:, 2:3] + jnp.sum(pos.astype(jnp.float32),
                                         axis=1, keepdims=True)
    acc_ref[:, 0:1] = l_new
    acc_ref[:, 1:2] = sps_new
    acc_ref[:, 2:3] = npos_new

    @pl.when(k == pl.num_programs(1) - 1)
    def _():
        lse = shift + jnp.log(l_new)                                  # (tm, 1)
        # Single epilogue store: [sum_j pos*log_prob, num_positives].
        out_ref[...] = jnp.concatenate([sps_new - npos_new * lse, npos_new],
                                       axis=1)


# ---------------------------------------------------------------------------
# Tile selection: cap by batch size, shrink to a VMEM budget, decide whether
# the key matrix can stay fully VMEM-resident.
# ---------------------------------------------------------------------------
def _choose_tiles(B, D_p, itemsize, block_rows, block_cols,
                  vmem_budget_bytes, max_resident_key_bytes):
    b128 = _round_up(max(B, 1), 128)
    tm = max(128, min(_round_up(block_rows, 128), b128))
    tk = max(128, min(_round_up(block_cols, 128), b128))
    while True:
        B_p = _round_up(B, math.lcm(tm, tk))
        resident_bytes = B_p * D_p * itemsize
        keys_resident = resident_bytes <= max_resident_key_bytes

        def _est(resident):
            key_bytes = 2 * (resident_bytes if resident else tk * D_p * itemsize)
            return (2 * tm * D_p * itemsize      # double-buffered query tiles
                    + key_bytes                  # key operand (x2 buffers)
                    + 3 * tm * tk * 4            # live f32 s tile + temporaries
                    + 3 * tm * 128 * 4)          # merged scratch + out (padded)

        est = _est(keys_resident)
        if est <= vmem_budget_bytes:
            return tm, tk, B_p, keys_resident, est
        if tm <= 128 and tk <= 128:
            if keys_resident and _est(False) < est:
                keys_resident, est = False, _est(False)
            return tm, tk, B_p, keys_resident, est
        # Shrink tk first: tm sets the arithmetic intensity of the key stream.
        if tk > 128:
            tk = _shrink_tile(tk)
        else:
            tm = _shrink_tile(tm)


# ---------------------------------------------------------------------------
# Wrapper
# ---------------------------------------------------------------------------
def csloss2(tmask, features1, labels1, worstk, temperature=0.5,
            scale_by_temperature=True, *, matmul_dtype=jnp.bfloat16,
            block_rows=512, block_cols=256,
            vmem_budget_bytes=24 * 2 ** 20,
            max_resident_key_bytes=8 * 2 ** 20):
    """Pallas implementation of CSLoss2.forward."""
    del scale_by_temperature  # unused by the reference forward pass

    features1 = jnp.asarray(features1, jnp.float32)
    B, D = features1.shape
    labels1 = jnp.asarray(labels1).reshape(-1).astype(jnp.int32)
    if labels1.shape[0] != B:
        raise ValueError('Num of labels does not match num of features')
    tmask = jnp.asarray(tmask).reshape(-1)
    worstk = jnp.asarray(worstk, jnp.int32).reshape(-1)

    D_p = _round_up(D, 128)
    itemsize = jnp.dtype(matmul_dtype).itemsize
    tm, tk, B_p, keys_resident, est = _choose_tiles(
        B, D_p, itemsize, block_rows, block_cols,
        vmem_budget_bytes, max_resident_key_bytes)

    # Zero padding does not change norms or dot products; padded rows/cols
    # carry a sentinel label and are masked out of denominator and positives.
    f_pad = jnp.zeros((B_p, D_p), jnp.float32).at[:B, :D].set(features1)
    lab_pad = jnp.full((B_p,), _PAD_LABEL, jnp.int32).at[:B].set(labels1)
    labels_q = lab_pad.reshape(B_p, 1)   # sublane-oriented (query rows)
    labels_k = lab_pad.reshape(1, B_p)   # lane-oriented (key columns), resident

    inv_sqrt_t = 1.0 / math.sqrt(float(temperature))
    shift = 1.0 / float(temperature)     # compile-time bound on |s_ij|

    # Raise the scoped-VMEM limit above v5e's 16 MiB default but stay well
    # under v7x's 64 MiB physical VMEM per TensorCore.
    vmem_limit = int(min(48 * 2 ** 20, max(32 * 2 ** 20, int(est * 1.5))))

    # --- prep: normalize + fold 1/sqrt(T) + cast to MXU dtype ---------------
    if B_p <= 1024:
        prep_rows = B_p
    else:
        prep_rows = next(c for c in (1024, 512, 256, 128) if B_p % c == 0)
    while (prep_rows > 128 and prep_rows % 2 == 0
           and 2 * prep_rows * D_p * (4 + itemsize) > vmem_budget_bytes):
        prep_rows //= 2

    f_scaled = pl.pallas_call(
        functools.partial(_normalize_scale_kernel, inv_sqrt_t=inv_sqrt_t),
        out_shape=jax.ShapeDtypeStruct((B_p, D_p), matmul_dtype),
        grid_spec=pltpu.PrefetchScalarGridSpec(
            num_scalar_prefetch=0,
            grid=(B_p // prep_rows,),
            in_specs=[pl.BlockSpec((prep_rows, D_p), lambda i: (i, 0))],
            out_specs=pl.BlockSpec((prep_rows, D_p), lambda i: (i, 0))),
        compiler_params=pltpu.CompilerParams(
            dimension_semantics=("parallel",),
            vmem_limit_bytes=vmem_limit),
    )(f_pad)

    # --- main tiled kernel ---------------------------------------------------
    if keys_resident:
        # Full key matrix as one constant block: one HBM read total.
        key_spec = pl.BlockSpec((B_p, D_p), lambda i, k: (0, 0))
    else:
        # Streamed key tiles (re-read once per row tile); tm sets intensity.
        key_spec = pl.BlockSpec((tk, D_p), lambda i, k: (k, 0))

    grid = (B_p // tm, B_p // tk)
    row_stats = pl.pallas_call(
        functools.partial(_csloss2_tile_kernel, shift=shift,
                          block_cols=tk, keys_resident=keys_resident),
        out_shape=jax.ShapeDtypeStruct((B_p, 2), jnp.float32),
        grid_spec=pltpu.PrefetchScalarGridSpec(
            num_scalar_prefetch=0,
            grid=grid,
            in_specs=[
                pl.BlockSpec((tm, D_p), lambda i, k: (i, 0)),   # query feats
                key_spec,                                       # key feats
                pl.BlockSpec((tm, 1), lambda i, k: (i, 0)),     # query labels
                pl.BlockSpec((1, B_p), lambda i, k: (0, 0)),    # key labels (resident)
            ],
            out_specs=pl.BlockSpec((tm, 2), lambda i, k: (i, 0)),
            scratch_shapes=[pltpu.VMEM((tm, 3), jnp.float32)]),  # merged acc
        compiler_params=pltpu.CompilerParams(
            # TODO(synk): on v7x use pltpu.CORE_PARALLEL on the row axis to
            # guarantee the 2-TensorCore split; kept portable here.
            dimension_semantics=("parallel", "arbitrary"),
            vmem_limit_bytes=vmem_limit),
    )(f_scaled, f_scaled, labels_q, labels_k)

    sum_lp = row_stats[:B, 0]
    num_pos = row_stats[:B, 1]

    # mask3[i] = 1 if labels1[i] in worstk  (cheap O(B*K) glue in plain JAX).
    mask3 = jnp.any(labels1[:, None] == worstk[None, :], axis=1)

    select = (num_pos > 0) & mask3 & (tmask > 0)
    per_row = jnp.where(select, sum_lp / jnp.maximum(num_pos, 1.0), 0.0)
    count = jnp.sum(select.astype(jnp.float32))
    # Mean over selected rows of -log_prob (NaN if nothing is selected,
    # matching torch.mean over an empty tensor).
    return -jnp.sum(per_row) / count


# ---------------------------------------------------------------------------
# Plain-JAX reference mirroring the PyTorch forward (for self-checking).
# ---------------------------------------------------------------------------
def _csloss2_ref_jax(tmask, features1, labels1, worstk, temperature=0.5):
    f = features1.astype(jnp.float32)
    f = f / jnp.maximum(jnp.linalg.norm(f, axis=1, keepdims=True), 1e-12)
    lab = labels1.reshape(-1, 1)
    mask = (lab == lab.T).astype(jnp.float32)
    mask3 = jnp.any(lab == jnp.asarray(worstk, jnp.int32)[None, :], axis=1)
    s = (f @ f.T) / temperature
    logits = s - jnp.max(s, axis=1, keepdims=True)
    e = jnp.exp(logits)
    num_pos = jnp.sum(mask, axis=1)
    denom = (jnp.sum(e * (1.0 - mask), axis=1, keepdims=True)
             + jnp.sum(e * mask, axis=1, keepdims=True))
    log_probs = logits - jnp.log(denom)
    row_sum = jnp.sum(log_probs * mask, axis=1)
    sel = (num_pos > 0) & mask3 & (jnp.asarray(tmask).reshape(-1) > 0)
    per_row = jnp.where(sel, row_sum / num_pos, 0.0)
    return -jnp.sum(per_row) / jnp.sum(sel.astype(jnp.float32))


def _check(tmask, feats, labels, worstk, temperature, **kw):
    ref = _csloss2_ref_jax(tmask, feats, labels, worstk, temperature)

    # f32-MXU path: tight parity with the reference forward.
    loss_f32 = csloss2(tmask, feats, labels, worstk, temperature,
                       matmul_dtype=jnp.float32, **kw)
    loss_f32 = jax.block_until_ready(loss_f32)
    assert jnp.allclose(loss_f32, ref, atol=2e-3, rtol=2e-3), (loss_f32, ref)

    # Default fast path: bf16 MXU inputs with f32 accumulation (~1e-3 logits).
    loss_bf16 = csloss2(tmask, feats, labels, worstk, temperature, **kw)
    loss_bf16 = jax.block_until_ready(loss_bf16)
    assert jnp.allclose(loss_bf16, ref, atol=5e-2, rtol=5e-2), (loss_bf16, ref)


if __name__ == "__main__":
    key = jax.random.PRNGKey(0)

    # --- small single-tile case (grid (1, 1), resident keys) ----------------
    k1, k2, k3 = jax.random.split(key, 3)
    B, D = 8, 32
    features1 = jax.random.normal(k1, (B, D), dtype=jnp.float32)
    labels1 = jax.random.randint(k2, (B,), 0, 4, dtype=jnp.int32)
    tmask = jax.random.bernoulli(k3, 0.8, (B,)).astype(jnp.float32)
    worstk = jnp.array([1, 3], dtype=jnp.int32)
    # Make sure at least one row survives the selection gate.
    labels1 = labels1.at[0].set(1)
    tmask = tmask.at[0].set(1.0)
    _check(tmask, features1, labels1, worstk, temperature=0.5)

    # --- medium case with padding, default (auto) tiling --------------------
    k4, k5, k6 = jax.random.split(jax.random.PRNGKey(1), 3)
    B2, D2 = 200, 96
    features2 = jax.random.normal(k4, (B2, D2), dtype=jnp.float32)
    labels2 = jax.random.randint(k5, (B2,), 0, 6, dtype=jnp.int32)
    tmask2 = jax.random.bernoulli(k6, 0.7, (B2,)).astype(jnp.float32)
    worstk2 = jnp.array([0, 2, 4], dtype=jnp.int32)
    labels2 = labels2.at[0].set(2)
    tmask2 = tmask2.at[0].set(1.0)
    _check(tmask2, features2, labels2, worstk2, temperature=0.5)

    # --- multi-tile grid (2, 2): resident-key path with in-kernel slicing ---
    _check(tmask2, features2, labels2, worstk2, temperature=0.5,
           block_rows=128, block_cols=128)

    # --- multi-tile grid (2, 2): forced streamed-key path -------------------
    _check(tmask2, features2, labels2, worstk2, temperature=0.5,
           block_rows=128, block_cols=128, max_resident_key_bytes=0)

    print("KERNEL_OK")
</pallas_src>

<mosaic_0001>
module attributes {stable_mosaic.version = 11 : i64} {
  func.func @_normalize_scale_kernel(%arg0: i32, %arg1: memref<128x128xf32, #tpu.memory_space<vmem>>, %arg2: memref<128x128xf32, #tpu.memory_space<vmem>>) attributes {dimension_semantics = [#tpu.dimension_semantics<parallel>], iteration_bounds = array<i64: 1>, scalar_prefetch = 0 : i64, scratch_operands = 0 : i64, tpu.core_type = #tpu.core_type<tc>, window_params = [{transform_indices = @transform_0, window_bounds = array<i64: 128, 128>}, {transform_indices = @transform_1, window_bounds = array<i64: 128, 128>}]} {
    %c0 = arith.constant 0 : index
    %c0_0 = arith.constant 0 : index
    %0 = vector.load %arg1[%c0, %c0_0] : memref<128x128xf32, #tpu.memory_space<vmem>>, vector<128x128xf32>
    %1 = arith.mulf %0, %0 : vector<128x128xf32>
    %cst = arith.constant dense<0.000000e+00> : vector<128xf32>
    %2 = vector.multi_reduction <add>, %1, %cst [1] : vector<128x128xf32> to vector<128xf32>
    %3 = vector.shape_cast %2 : vector<128xf32> to vector<128x1xf32>
    %cst_1 = arith.constant 1.000000e-24 : f32
    %4 = vector.broadcast %cst_1 : f32 to vector<128x1xf32>
    %5 = arith.maximumf %3, %4 : vector<128x1xf32>
    %6 = math.rsqrt %5 : vector<128x1xf32>
    %cst_2 = arith.constant 1.41421354 : f32
    %7 = vector.broadcast %cst_2 : f32 to vector<128x1xf32>
    %8 = arith.mulf %6, %7 : vector<128x1xf32>
    %9 = vector.broadcast %8 : vector<128x1xf32> to vector<128x128xf32>
    %10 = arith.mulf %0, %9 : vector<128x128xf32>
    %c0_3 = arith.constant 0 : index
    %c0_4 = arith.constant 0 : index
    %11 = vector.load %arg2[%c0_3, %c0_4] : memref<128x128xf32, #tpu.memory_space<vmem>>, vector<128x128xf32>
    tpu.vector_store %arg2[%c0_3, %c0_4], %10 {strides = array<i32>} : memref<128x128xf32, #tpu.memory_space<vmem>>, vector<128x128xf32>,
    return
  }
  func.func @transform_0(%arg0: i32) -> (i32, i32) {
    %c0_i32 = arith.constant 0 : i32
    %c0_i32_0 = arith.constant 0 : i32
    return %arg0, %c0_i32 : i32, i32
  }
  func.func @transform_1(%arg0: i32) -> (i32, i32) {
    %c0_i32 = arith.constant 0 : i32
    %c0_i32_0 = arith.constant 0 : i32
    return %arg0, %c0_i32 : i32, i32
  }
}

</mosaic_0001>

<bundles_post_ra>
// kernel: tpu_custom_call.1
= control target key start
LH: loop header
LB: loop body
LE: loop exit
PB: predicated region body
PF: predicated region fallthrough
CT: control target
= control target key end

     0   :  { %6 = vsyncpa [#allocation3], 0  ;;  %s664_s0 = inlined_call_operand.hbm [shape: f32[128,128], index: 0, kind: input, shape index: {}]   ;;  %s665_s1 = inlined_call_operand.hbm [shape: f32[128,128], index: 1, kind: output, shape index: {}]  }
   0x1   :  { %7 = vsyncpa [#allocation4], 0  ;;  %s12_s8 = sshll.u32 %s664_s0, 4  ;;  %s420_s9 = smov [#allocation2]   ;;  %s13_s8 = int_to_ptr.hbm [resolvable:$true] %s12_s8 }
   0x2   :  { %s14_s10 = sshll.u32 %s420_s9, 4  ;;  %s421_s11 = smov 128   ;;  %s15_s10 = int_to_ptr.vmem [resolvable:$true] %s14_s10 }
   0x3   :  { %s422_s12 = smov 8  }
   0x4   :  { %20 = dma.hbm_to_vmem [thread:$0]  %s13_s8, 2048, %s15_s10, [#allocation3], %s421_s11, %s421_s11, %s422_s12  }
   0x5   :  { %416 = dma.done.wait [#allocation3], 2048  }
   0x6   :  { %417 = vsyncadd [#allocation3], 4294965248  ;;  %v440_v0 = vld [vmem:[#allocation2 + $0x20] sm:$0xff]  ;;  %v442_v1 = vld [vmem:[#allocation2 + $0x10] sm:$0xff]  ;;  %s423_s0 = smov [#allocation5]   ;;  %s319_s16 = sshll.u32 %s665_s1, 4  ;;  %s320_s16 = int_to_ptr.hbm [resolvable:$true] %s319_s16 }
   0x7   :  { %v444_v2 = vld [vmem:[#allocation2] sm:$0xff]  ;;  %v45_v3 = vmul.f32 %v440_v0, %v440_v0  ;;  %v43_v4 = vmul.f32 %v442_v1, %v442_v1  ;;  %v452_v6 = vld [vmem:[#allocation2 + $0x28] sm:$0xff]  ;;  %v454_v7 = vld [vmem:[#allocation2 + $0x18] sm:$0xff]  ;;  %s317_s13 = sshll.u32 %s423_s0, 4  ;;  %s318_s13 = int_to_ptr.vmem [resolvable:$true] %s317_s13 }
   0x8   :  { %v41_v5 = vmul.f32 %v444_v2, %v444_v2  ;;  %v456_v8 = vld [vmem:[#allocation2 + $0x8] sm:$0xff]  ;;  %v46_v9 = vmul.f32 %v452_v6, %v452_v6  ;;  %v44_v10 = vmul.f32 %v454_v7, %v454_v7  ;;  %v464_v12 = vld [vmem:[#allocation2 + $0x40] sm:$0xff]  ;;  %v466_v13 = vld [vmem:[#allocation2 + $0x38] sm:$0xff] }
   0x9   :  { %65 = vadd.xlane.f32.xlu2 %v45_v3  ;;  %61 = vadd.xlane.f32.xlu1 %v43_v4  ;;  %v42_v11 = vmul.f32 %v456_v8, %v456_v8  ;;  %v468_v14 = vld [vmem:[#allocation2 + $0x30] sm:$0xff]  ;;  %v49_v15 = vmul.f32 %v464_v12, %v464_v12  ;;  %v48_v16 = vmul.f32 %v466_v13, %v466_v13  ;;  %v476_v18 = vld [vmem:[#allocation2 + $0x58] sm:$0xff]  ;;  %v480_v20 = vld [vmem:[#allocation2 + $0x48] sm:$0xff] }
   0xa   :  { %57 = vadd.xlane.f32.xlu0 %v41_v5  ;;  %v47_v17 = vmul.f32 %v468_v14, %v468_v14  ;;  %v478_v19 = vld [vmem:[#allocation2 + $0x50] sm:$0xff]  ;;  %v52_v21 = vmul.f32 %v476_v18, %v476_v18  ;;  %v50_v23 = vmul.f32 %v480_v20, %v480_v20  ;;  %v490_v25 = vld [vmem:[#allocation2 + $0x68] sm:$0xff]  ;;  %v492_v26 = vld [vmem:[#allocation2 + $0x60] sm:$0xff] }
   0xb   :  { %v51_v22 = vmul.f32 %v478_v19, %v478_v19  ;;  %v488_v24 = vld [vmem:[#allocation2 + $0x70] sm:$0xff]  ;;  %v54_v28 = vmul.f32 %v490_v25, %v490_v25  ;;  %v53_v29 = vmul.f32 %v492_v26, %v492_v26  ;;  %v500_v30 = vld [vmem:[#allocation2 + $0x78] sm:$0xff] }
   0xc   :  { %v55_v27 = vmul.f32 %v488_v24, %v488_v24  ;;  %v56_v31 = vmul.f32 %v500_v30, %v500_v30 }
  0x11   :  { %67 = vadd.xlane.f32.xlu2 %v46_v9  ;;  %63 = vadd.xlane.f32.xlu1 %v44_v10 }
  0x12   :  { %59 = vadd.xlane.f32.xlu0 %v42_v11 }
  0x19   :  { %73 = vadd.xlane.f32.xlu2 %v49_v15  ;;  %71 = vadd.xlane.f32.xlu1 %v48_v16 }
  0x1a   :  { %69 = vadd.xlane.f32.xlu0 %v47_v17 }
  0x21   :  { %79 = vadd.xlane.f32.xlu2 %v52_v21  ;;  %77 = vadd.xlane.f32.xlu1 %v51_v22 }
  0x22   :  { %75 = vadd.xlane.f32.xlu0 %v50_v23 }
  0x29   :  { %85 = vadd.xlane.f32.xlu2 %v55_v27  ;;  %83 = vadd.xlane.f32.xlu1 %v54_v28 }
  0x2a   :  { %81 = vadd.xlane.f32.xlu0 %v53_v29 }
  0x32   :  { %87 = vadd.xlane.f32.xlu0 %v56_v31 }
  0x7c   :  { %v66_v32 = vpop.xlane.xlu2 %65  ;;  %v62_v33 = vpop.xlane.xlu1 %61 }
  0x7d   :  { %v93_v34 = vmax.f32 %v66_v32, 1e-24  ;;  %v91_v35 = vmax.f32 %v62_v33, 1e-24  ;;  %v58_v36 = vpop.xlane.xlu0 %57 }
  0x7e   :  { %v89_v37 = vmax.f32 %v58_v36, 1e-24 }
  0x7f   :  { %336 = vrsqrt.f32 %v93_v34  ;;  %vm151_vm0 = vweird.f32 %v93_v34  ;;  %vm131_vm1 = vweird.f32 %v91_v35 }
  0x80   :  { %338 = vrsqrt.f32 %v91_v35  ;;  %vm111_vm3 = vweird.f32 %v89_v37 }
  0x81   :  { %340 = vrsqrt.f32 %v89_v37 }
  0x84   :  { %v68_v38 = vpop.xlane.xlu2 %67  ;;  %v64_v39 = vpop.xlane.xlu1 %63 }
  0x85   :  { %v337_v40 = vpop.eup %336  ;;  %v504_v41 = vmax.f32 %v68_v38, 1e-24  ;;  %v506_v42 = vmax.f32 %v64_v39, 1e-24  ;;  %v60_v43 = vpop.xlane.xlu0 %59 }
  0x86   :  { %v339_v44 = vpop.eup %338  ;;  %v146_v45 = vmul.f32 %v337_v40, %v93_v34  ;;  %v508_v46 = vmax.f32 %v60_v43, 1e-24  ;;  %vm152_vm2 = vweird.f32 %v337_v40 }
  0x87   :  { %v341_v47 = vpop.eup %340  ;;  %v126_v48 = vmul.f32 %v339_v44, %v91_v35  ;;  %342 = vrsqrt.f32 %v504_v41  ;;  %vm132_vm4 = vweird.f32 %v339_v44  ;;  %vm161_vm5 = vweird.f32 %v504_v41  ;;  %vm153_vm7 = vmor %vm151_vm0, %vm152_vm2 }
  0x88   :  { %v147_v49 = vmul.f32 %v337_v40, %v146_v45  ;;  %v106_v50 = vmul.f32 %v341_v47, %v89_v37  ;;  %344 = vrsqrt.f32 %v506_v42  ;;  %vm112_vm6 = vweird.f32 %v341_v47  ;;  %vm133_vm8 = vmor %vm131_vm1, %vm132_vm4 }
  0x89   :  { %v127_v51 = vmul.f32 %v339_v44, %v126_v48  ;;  %346 = vrsqrt.f32 %v508_v46  ;;  %vm113_vm9 = vmor %vm111_vm3, %vm112_vm6  ;;  %vm141_vm10 = vweird.f32 %v506_v42  ;;  %vm121_vm15 = vweird.f32 %v508_v46 }
  0x8a   :  { %v148_v52 = vmul.f32 0.5, %v147_v49  ;;  %v107_v53 = vmul.f32 %v341_v47, %v106_v50 }
  0x8b   :  { %v128_v54 = vmul.f32 0.5, %v127_v51 }
  0x8c   :  { %v149_v55 = vsub.f32 1.5, %v148_v52  ;;  %v108_v56 = vmul.f32 0.5, %v107_v53  ;;  %v74_v57 = vpop.xlane.xlu2 %73  ;;  %v72_v58 = vpop.xlane.xlu1 %71 }
  0x8d   :  { %v513_v59 = vpop.eup %342  ;;  %v129_v60 = vsub.f32 1.5, %v128_v54  ;;  %v516_v61 = vmax.f32 %v74_v57, 1e-24  ;;  %v70_v62 = vpop.xlane.xlu0 %69  ;;  %v529_v15 = vmax.f32 %v72_v58, 1e-24 }
  0x8e   :  { %v518_v63 = vpop.eup %344  ;;  %v150_v3 = vmul.f32 %v337_v40, %v149_v55  ;;  %v109_v4 = vsub.f32 1.5, %v108_v56  ;;  %v156_v5 = vmul.f32 %v513_v59, %v504_v41  ;;  %vm162_vm11 = vweird.f32 %v513_v59 }
  0x8f   :  { %v522_v9 = vpop.eup %346  ;;  %v130_v10 = vmul.f32 %v339_v44, %v129_v60  ;;  %v136_v11 = vmul.f32 %v518_v63, %v506_v42  ;;  %348 = vrsqrt.f32 %v516_v61  ;;  %vm142_vm12 = vweird.f32 %v518_v63  ;;  %vm163_vm14 = vmor %vm161_vm5, %vm162_vm11 }
  0x90   :  { %v154_v16 = vsel %vm153_vm7, %v337_v40, %v150_v3  ;;  %v110_v17 = vmul.f32 %v341_v47, %v109_v4  ;;  %v157_v21 = vmul.f32 %v513_v59, %v156_v5  ;;  %v116_v22 = vmul.f32 %v522_v9, %v508_v46  ;;  %vm143_vm0 = vmor %vm141_vm10, %vm142_vm12 }
  0x91   :  { %v269_v23 = vmul.f32 1.4142135, %v154_v16  ;;  %v134_v27 = vsel %vm133_vm8, %v339_v44, %v130_v10  ;;  %v137_v28 = vmul.f32 %v518_v63, %v136_v11  ;;  %350 = vrsqrt.f32 %v529_v15 }
  0x92   :  { %v267_v29 = vmul.f32 1.4142135, %v134_v27  ;;  %v114_v31 = vsel %vm113_vm9, %v341_v47, %v110_v17  ;;  %v158_v32 = vmul.f32 0.5, %v157_v21  ;;  %v117_v33 = vmul.f32 %v522_v9, %v116_v22 }
  0x93   :  { %v285_v34 = vmul.f32 %v269_v23, %v440_v0  ;;  %v265_v35 = vmul.f32 1.4142135, %v114_v31  ;;  %v138_v36 = vmul.f32 0.5, %v137_v28  ;;  %v549_v0 = vmax.f32 %v70_v62, 1e-24 }
  0x94   :  { %v283_v38 = vmul.f32 %v267_v29, %v442_v1  ;;  %v159_v39 = vsub.f32 1.5, %v158_v32  ;;  %v118_v37 = vmul.f32 0.5, %v117_v33  ;;  %v80_v40 = vpop.xlane.xlu2 %79  ;;  %v78_v43 = vpop.xlane.xlu1 %77  ;;  %vm122_vm13 = vweird.f32 %v522_v9 }
  0x95   :  { %v545_v44 = vpop.eup %348  ;;  %301 = vst [vmem:[#allocation5 + $0x20] sm:$0xff] %v285_v34  ;;  %v281_v45 = vmul.f32 %v265_v35, %v444_v2  ;;  %v139_v47 = vsub.f32 1.5, %v138_v36  ;;  %v76_v48 = vpop.xlane.xlu0 %75  ;;  %352 = vrsqrt.f32 %v549_v0  ;;  %v562_v51 = vmax.f32 %v80_v40, 1e-24  ;;  %vm123_vm1 = vmor %vm121_vm15, %vm122_vm13 }
  0x96   :  { %299 = vst [vmem:[#allocation5 + $0x10] sm:$0xff] %v283_v38  ;;  %v160_v1 = vmul.f32 %v513_v59, %v159_v39  ;;  %v119_v49 = vsub.f32 1.5, %v118_v37  ;;  %v186_v50 = vmul.f32 %v545_v44, %v516_v61  ;;  %v571_v54 = vmax.f32 %v78_v43, 1e-24 }
  0x97   :  { %297 = vst [vmem:[#allocation5] sm:$0xff] %v281_v45  ;;  %v140_v2 = vmul.f32 %v518_v63, %v139_v47  ;;  %354 = vrsqrt.f32 %v562_v51  ;;  %v351_v56 = vpop.eup %350  ;;  %vm191_vm2 = vweird.f32 %v516_v61  ;;  %vm192_vm3 = vweird.f32 %v545_v44 }
  0x98   :  { %v164_v52 = vsel %vm163_vm14, %v513_v59, %v160_v1  ;;  %v120_v53 = vmul.f32 %v522_v9, %v119_v49  ;;  %v187_v41 = vmul.f32 %v545_v44, %v186_v50  ;;  %356 = vrsqrt.f32 %v571_v54  ;;  %vm193_vm4 = vmor %vm191_vm2, %vm192_vm3 }
  0x99   :  { %v270_v55 = vmul.f32 1.4142135, %v164_v52  ;;  %v144_v46 = vsel %vm143_vm0, %v518_v63, %v140_v2  ;;  %v176_v62 = vmul.f32 %v351_v56, %v529_v15  ;;  %v584_v4 = vmax.f32 %v76_v48, 1e-24 }
  0x9a   :  { %v268_v57 = vmul.f32 1.4142135, %v144_v46  ;;  %v124_v58 = vsel %vm123_vm1, %v522_v9, %v120_v53  ;;  %v188_v42 = vmul.f32 0.5, %v187_v41  ;;  %vm181_vm5 = vweird.f32 %v529_v15 }
  0x9b   :  { %v286_v59 = vmul.f32 %v270_v55, %v452_v6  ;;  %v266_v60 = vmul.f32 1.4142135, %v124_v58  ;;  %v353_v9 = vpop.eup %352  ;;  %v177_v16 = vmul.f32 %v351_v56, %v176_v62  ;;  %358 = vrsqrt.f32 %v584_v4 }
  0x9c   :  { %v284_v63 = vmul.f32 %v268_v57, %v454_v7  ;;  %v189_v3 = vsub.f32 1.5, %v188_v42  ;;  %v86_v5 = vpop.xlane.xlu2 %85  ;;  %v84_v10 = vpop.xlane.xlu1 %83  ;;  %v166_v21 = vmul.f32 %v353_v9, %v549_v0  ;;  %vm171_vm6 = vweird.f32 %v549_v0 }
  0x9d   :  { %302 = vst [vmem:[#allocation5 + $0x28] sm:$0xff] %v286_v59  ;;  %v282_v11 = vmul.f32 %v266_v60, %v456_v8  ;;  %v587_v6 = vmax.f32 %v86_v5, 1e-24  ;;  %v592_v7 = vmax.f32 %v84_v10, 1e-24  ;;  %v594_v22 = vpop.eup %354  ;;  %v178_v8 = vmul.f32 0.5, %v177_v16  ;;  %v82_v23 = vpop.xlane.xlu0 %81 }
  0x9e   :  { %300 = vst [vmem:[#allocation5 + $0x18] sm:$0xff] %v284_v63  ;;  %v190_v17 = vmul.f32 %v545_v44, %v189_v3  ;;  %v357_v27 = vpop.eup %356  ;;  %v167_v29 = vmul.f32 %v353_v9, %v166_v21  ;;  %v216_v31 = vmul.f32 %v594_v22, %v562_v51  ;;  %vm221_vm7 = vweird.f32 %v562_v51 }
  0x9f   :  { %298 = vst [vmem:[#allocation5 + $0x8] sm:$0xff] %v282_v11  ;;  %360 = vrsqrt.f32 %v587_v6  ;;  %v179_v61 = vsub.f32 1.5, %v178_v8  ;;  %vm182_vm8 = vweird.f32 %v351_v56  ;;  %v206_v33 = vmul.f32 %v357_v27, %v571_v54 }
  0xa0   :  { %v194_v28 = vsel %vm193_vm4, %v545_v44, %v190_v17  ;;  %v168_v34 = vmul.f32 0.5, %v167_v29  ;;  %v217_v35 = vmul.f32 %v594_v22, %v216_v31  ;;  %vm211_vm9 = vweird.f32 %v571_v54  ;;  %vm183_vm10 = vmor %vm181_vm5, %vm182_vm8 }
  0xa1   :  { %v273_v32 = vmul.f32 1.4142135, %v194_v28  ;;  %362 = vrsqrt.f32 %v592_v7  ;;  %v180_v38 = vmul.f32 %v351_v56, %v179_v61  ;;  %v207_v39 = vmul.f32 %v357_v27, %v206_v33  ;;  %v614_v40 = vpop.eup %358 }
  0xa2   :  { %v612_v37 = vmax.f32 %v82_v23, 1e-24  ;;  %v169_v43 = vsub.f32 1.5, %v168_v34  ;;  %vm172_vm11 = vweird.f32 %v353_v9  ;;  %v218_v44 = vmul.f32 0.5, %v217_v35 }
  0xa3   :  { %v289_v36 = vmul.f32 %v273_v32, %v464_v12  ;;  %vm251_vm12 = vweird.f32 %v587_v6  ;;  %v184_v47 = vsel %vm183_vm10, %v351_v56, %v180_v38  ;;  %vm222_vm13 = vweird.f32 %v594_v22  ;;  %vm173_vm14 = vmor %vm171_vm6, %vm172_vm11 }
  0xa4   :  { %v208_v12 = vmul.f32 0.5, %v207_v39  ;;  %v196_v48 = vmul.f32 %v614_v40, %v584_v4  ;;  %v272_v1 = vmul.f32 1.4142135, %v184_v47  ;;  %v170_v49 = vmul.f32 %v353_v9, %v169_v43  ;;  %vm223_vm0 = vmor %vm221_vm7, %vm222_vm13 }
  0xa5   :  { %v361_v45 = vpop.eup %360  ;;  %305 = vst [vmem:[#allocation5 + $0x40] sm:$0xff] %v289_v36  ;;  %v219_v50 = vsub.f32 1.5, %v218_v44  ;;  %vm212_vm15 = vweird.f32 %v357_v27  ;;  %364 = vrsqrt.f32 %v612_v37  ;;  %v88_v59 = vpop.xlane.xlu0 %87  ;;  %vm202_vm2 = vweird.f32 %v614_v40 }
  0xa6   :  { %v246_v15 = vmul.f32 %v361_v45, %v587_v6  ;;  %v209_v2 = vsub.f32 1.5, %v208_v12  ;;  %v197_v52 = vmul.f32 %v614_v40, %v196_v48  ;;  %v288_v41 = vmul.f32 %v272_v1, %v466_v13  ;;  %vm213_vm1 = vmor %vm211_vm9, %vm212_vm15 }
  0xa7   :  { %v363_v53 = vpop.eup %362  ;;  %v174_v55 = vsel %vm173_vm14, %v353_v9, %v170_v49  ;;  %v220_v46 = vmul.f32 %v594_v22, %v219_v50  ;;  %vm252_vm3 = vweird.f32 %v361_v45  ;;  %v104_v11 = vmax.f32 %v88_v59, 1e-24 }
  0xa8   :  { %v247_v56 = vmul.f32 %v361_v45, %v246_v15  ;;  %v271_v57 = vmul.f32 1.4142135, %v174_v55  ;;  %v210_v0 = vmul.f32 %v357_v27, %v209_v2  ;;  %v198_v58 = vmul.f32 0.5, %v197_v52  ;;  %304 = vst [vmem:[#allocation5 + $0x38] sm:$0xff] %v288_v41  ;;  %vm253_vm6 = vmor %vm251_vm12, %vm252_vm3 }
  0xa9   :  { %v236_v42 = vmul.f32 %v363_v53, %v592_v7  ;;  %v224_v60 = vsel %vm223_vm0, %v594_v22, %v220_v46  ;;  %vm201_vm4 = vweird.f32 %v584_v4  ;;  %vm241_vm7 = vweird.f32 %v592_v7 }
  0xaa   :  { %v248_v13 = vmul.f32 0.5, %v247_v56  ;;  %v287_v62 = vmul.f32 %v271_v57, %v468_v14  ;;  %v276_v51 = vmul.f32 1.4142135, %v224_v60  ;;  %v214_v63 = vsel %vm213_vm1, %v357_v27, %v210_v0  ;;  %vm203_vm5 = vmor %vm201_vm4, %vm202_vm2 }
  0xab   :  { %v199_v3 = vsub.f32 1.5, %v198_v58  ;;  %v275_v5 = vmul.f32 1.4142135, %v214_v63  ;;  %v237_v9 = vmul.f32 %v363_v53, %v236_v42  ;;  %v365_v16 = vpop.eup %364  ;;  %vm242_vm8 = vweird.f32 %v363_v53 }
  0xac   :  { %v249_v10 = vsub.f32 1.5, %v248_v13  ;;  %303 = vst [vmem:[#allocation5 + $0x30] sm:$0xff] %v287_v62  ;;  %v292_v17 = vmul.f32 %v276_v51, %v476_v18  ;;  %v226_v8 = vmul.f32 %v365_v16, %v612_v37  ;;  %366 = vrsqrt.f32 %v104_v11  ;;  %vm243_vm9 = vmor %vm241_vm7, %vm242_vm8 }
  0xad   :  { %v200_v54 = vmul.f32 %v614_v40, %v199_v3  ;;  %v291_v21 = vmul.f32 %v275_v5, %v478_v19  ;;  %v238_v22 = vmul.f32 0.5, %v237_v9  ;;  %vm232_vm10 = vweird.f32 %v365_v16 }
  0xae   :  { %v250_v14 = vmul.f32 %v361_v45, %v249_v10  ;;  %308 = vst [vmem:[#allocation5 + $0x58] sm:$0xff] %v292_v17  ;;  %v227_v27 = vmul.f32 %v365_v16, %v226_v8  ;;  %vm231_vm11 = vweird.f32 %v612_v37  ;;  %vm261_vm14 = vweird.f32 %v104_v11 }
  0xaf   :  { %v204_v23 = vsel %vm203_vm5, %v614_v40, %v200_v54  ;;  %307 = vst [vmem:[#allocation5 + $0x50] sm:$0xff] %v291_v21  ;;  %v239_v4 = vsub.f32 1.5, %v238_v22  ;;  %vm233_vm12 = vmor %vm231_vm11, %vm232_vm10 }
  0xb0   :  { %v274_v18 = vmul.f32 1.4142135, %v204_v23  ;;  %v254_v19 = vsel %vm253_vm6, %v361_v45, %v250_v14  ;;  %v228_v32 = vmul.f32 0.5, %v227_v27 }
  0xb1   :  { %v279_v28 = vmul.f32 1.4142135, %v254_v19  ;;  %v240_v31 = vmul.f32 %v363_v53, %v239_v4 }
  0xb2   :  { %v290_v29 = vmul.f32 %v274_v18, %v480_v20  ;;  %v229_v33 = vsub.f32 1.5, %v228_v32  ;;  %v367_v7 = vpop.eup %366 }
  0xb3   :  { %v295_v61 = vmul.f32 %v279_v28, %v488_v24  ;;  %v244_v6 = vsel %vm243_vm9, %v363_v53, %v240_v31  ;;  %v256_v36 = vmul.f32 %v367_v7, %v104_v11  ;;  %vm262_vm13 = vweird.f32 %v367_v7 }
  0xb4   :  { %306 = vst [vmem:[#allocation5 + $0x48] sm:$0xff] %v290_v29  ;;  %v278_v34 = vmul.f32 1.4142135, %v244_v6  ;;  %v230_v35 = vmul.f32 %v365_v16, %v229_v33  ;;  %vm263_vm15 = vmor %vm261_vm14, %vm262_vm13 }
  0xb5   :  { %311 = vst [vmem:[#allocation5 + $0x70] sm:$0xff] %v295_v61  ;;  %v257_v39 = vmul.f32 %v367_v7, %v256_v36 }
  0xb6   :  { %v294_v38 = vmul.f32 %v278_v34, %v490_v25  ;;  %v234_v20 = vsel %vm233_vm12, %v365_v16, %v230_v35 }
  0xb7   :  { %v277_v40 = vmul.f32 1.4142135, %v234_v20  ;;  %v258_v24 = vmul.f32 0.5, %v257_v39 }
  0xb8   :  { %310 = vst [vmem:[#allocation5 + $0x68] sm:$0xff] %v294_v38 }
  0xb9   :  { %v293_v43 = vmul.f32 %v277_v40, %v492_v26  ;;  %v259_v44 = vsub.f32 1.5, %v258_v24 }
  0xbb   :  { %309 = vst [vmem:[#allocation5 + $0x60] sm:$0xff] %v293_v43  ;;  %v260_v45 = vmul.f32 %v367_v7, %v259_v44 }
  0xbd   :  { %v264_v47 = vsel %vm263_vm15, %v367_v7, %v260_v45 }
  0xbe   :  { %v280_v25 = vmul.f32 1.4142135, %v264_v47 }
  0xc0   :  { %v296_v37 = vmul.f32 %v280_v25, %v500_v30 }
  0xc2   :  { %312 = vst [vmem:[#allocation5 + $0x78] sm:$0xff] %v296_v37 }
  0xc3   :  { %325 = dma.vmem_to_hbm [thread:$0]  %s318_s13, 2048, %s320_s16, [#allocation4], %s421_s11, %s421_s11, %s422_s12  }
  0xc4   :  { %418 = dma.done.wait [#allocation4], 2048  }
  0xc5   :  { %419 = vsyncadd [#allocation4], 4294965248 }
  0xc6   :  { %330 = vsyncpa [#allocation3], 1 }
  0xc7   :  { %331 = vsyncpa [#allocation4], 1 }

</bundles_post_ra>
